<compile_context>
chip_gen: v7x
topology: tpu7x:2x2x1
jax: 0.10.0
libtpu: 0.0.40
codegen_flags: <defaults>
</compile_context>

<pallas_src>
import math

import jax
import jax.numpy as jnp
from jax.experimental import pallas as pl
from jax.experimental.pallas import tpu as pltpu


def _layer_norm(x, gamma, beta, eps=1e-5):
    mu = jnp.mean(x, axis=-1, keepdims=True)
    var = jnp.mean((x - mu) ** 2, axis=-1, keepdims=True)
    return (x - mu) * jax.lax.rsqrt(var + eps) * gamma + beta


def _make_kernel(Bt, P, S, D, compute_dtype, approx_recip):
    cdt = compute_dtype

    def kernel(tgt_ref, sl_ref, wp_ref, wq_ref, wkv_ref, vec_ref, bkv_ref,
               rec_ref, mask_ref):
        tgt = tgt_ref[...]                      # (Bt*P, D) f32, kept for the residual add
        sl = sl_ref[...]                        # (Bt*S, Ds) f32

        vec = vec_ref[...]                      # (6, D) f32: packed biases / LN params
        bp = vec[0:1]
        g_s, b_s = vec[1:2], vec[2:3]
        g_t, b_t = vec[3:4], vec[4:5]
        bq = vec[5:6]                           # already scaled by 1/sqrt(D)
        bkv = bkv_ref[...]                      # (1, 2D) f32: [bk | bv@Wo + bo]

        # slot2target_projection (MXU, compute_dtype operands, f32 accumulate)
        slots_p = jnp.dot(sl.astype(cdt), wp_ref[...],
                          preferred_element_type=jnp.float32) + bp
        # pre-attention LayerNorms in f32 (v5e VPU has no bf16)
        s_ln = _layer_norm(slots_p, g_s, b_s)   # (Bt*S, D)
        t_ln = _layer_norm(tgt, g_t, b_t)       # (Bt*P, D)

        # MHA (1 head) in-projections. 1/sqrt(D) folded into wq/bq; [k | v@Wo] fused
        # into one matmul; packed bias added once to the wide result before slicing.
        q = jnp.dot(t_ln.astype(cdt), wq_ref[...],
                    preferred_element_type=jnp.float32) + bq           # (Bt*P, D)
        kv = jnp.dot(s_ln.astype(cdt), wkv_ref[...],
                     preferred_element_type=jnp.float32) + bkv         # (Bt*S, 2D)

        q3 = q.reshape(Bt, P, D).astype(cdt)
        k3 = kv[:, 0:D].reshape(Bt, S, D).astype(cdt)
        v3 = kv[:, D:2 * D].reshape(Bt, S, D).astype(cdt)              # v' = s_ln@Wvo + bvo

        # batched attention over the fused batch block
        scores = jnp.einsum("bpd,bsd->bps", q3, k3,
                            preferred_element_type=jnp.float32)        # (Bt, P, S) f32
        m = jnp.max(scores, axis=-1, keepdims=True)
        e = jnp.exp(scores - m)
        attn = e * pl.reciprocal(jnp.sum(e, axis=-1, keepdims=True),
                                 approx=approx_recip)                  # (Bt, P, S) f32

        # context; the MHA out-projection is already folded into v3, so this is the
        # last matmul of the kernel.
        ctx = jnp.einsum("bps,bsd->bpd", attn.astype(cdt), v3,
                         preferred_element_type=jnp.float32)           # (Bt, P, D) f32

        # residual cross-attn; MLP branch is Identity (mlp_ratio == 0)
        rec_ref[...] = tgt + ctx.reshape(Bt * P, D)                    # (Bt*P, D)
        # masks written directly in the module's [*, S, P] layout: tiny in-kernel
        # transpose (XLU/VMEM) instead of an HBM->HBM transpose in the wrapper.
        mask_ref[...] = jnp.transpose(attn, (0, 2, 1)).reshape(Bt * S, P)

    return kernel


def _step_vmem_bytes(Bt, P, S, D, Ds, compute_bytes):
    """Rough per-grid-step VMEM footprint (double-buffered I/O + weights + f32 temps)."""
    io = 2 * 4 * (Bt * P * D + Bt * S * Ds + Bt * P * D + Bt * S * P)
    weights = 2 * compute_bytes * (Ds * D + D * D + D * 2 * D) + 2 * 4 * (6 * D + 2 * D)
    inter = 4 * (Bt * S * 2 * D + 3 * Bt * P * S + 2 * Bt * P * D + 2 * Bt * S * D)
    return io + weights + inter


def _pick_block_batch(B, P, S, D, Ds, compute_bytes=4, target_rows=512,
                      vmem_budget_bytes=24 << 20):
    """How many batch elements to fuse per grid step.

    Memory-bound kernels want big blocks (measured ~29% of HBM roofline at 128-row
    tiles vs ~85% at 512-1024), so prefer the smallest divisor Bt of B with
    Bt*P >= target_rows, bounded by a conservative VMEM budget. Whenever Bt < B,
    Bt*P and Bt*S must be multiples of 8 (BlockSpec (8,128) rule on the
    second-to-last block dim)."""
    def tile_ok(d):
        return d == B or ((d * P) % 8 == 0 and (d * S) % 8 == 0)

    divisors = [d for d in range(1, B + 1) if B % d == 0 and tile_ok(d)]
    fitting = [d for d in divisors
               if _step_vmem_bytes(d, P, S, D, Ds, compute_bytes) <= vmem_budget_bytes]
    if not fitting:
        return divisors[0]
    for d in fitting:
        if d * P >= target_rows:
            return d
    return fitting[-1]


def cross_attn_forward(target, slots, params, block_batch=None,
                       compute_dtype=jnp.float32, approx_recip=None):
    """target: [B, P, D] float32; slots: [B, S, Ds] float32.

    compute_dtype: dtype of MXU operands (weights shipped in this dtype, f32 accumulate).
    approx_recip: use EUP approx reciprocal for softmax (defaults to True iff bf16)."""
    B, P, D = target.shape
    _, S, Ds = slots.shape
    cdt = compute_dtype
    cbytes = jnp.dtype(cdt).itemsize
    if approx_recip is None:
        approx_recip = (cdt != jnp.float32)

    Bt = block_batch if block_batch is not None else _pick_block_batch(B, P, S, D, Ds, cbytes)
    assert B % Bt == 0
    grid = (B // Bt,)

    # ---- one-time parameter packing / folding (outside the kernel) ----
    scale = 1.0 / math.sqrt(D)                      # head_dim == D for 1 head
    wq = (params["Wq"] * scale).astype(cdt)                                     # (D, D)
    wvo = params["Wv"] @ params["Wo"]               # fold out-projection into V
    wkv = jnp.concatenate([params["Wk"], wvo], axis=1).astype(cdt)              # (D, 2D)
    wp = params["Wp"].astype(cdt)                                               # (Ds, D)
    bvo = params["bv"] @ params["Wo"] + params["bo"]                            # (1, D)
    bkv = jnp.concatenate([params["bk"], bvo], axis=1)                          # (1, 2D) f32
    vecs = jnp.concatenate(                                                     # (6, D) f32
        [params["bp"], params["g_s"], params["b_s"], params["g_t"], params["b_t"],
         params["bq"] * scale], axis=0)

    # Flatten batch into the row (sublane) dimension -> one big matmul per projection.
    target2d = target.reshape(B * P, D)
    slots2d = slots.reshape(B * S, Ds)

    # Explicit VMEM limit: 2x the estimated footprint, never below the 32 MiB scoped
    # default and capped at 64 MiB so the same setting is safe on v7x (64 MiB physical).
    est = _step_vmem_bytes(Bt, P, S, D, Ds, cbytes)
    vmem_limit = int(min(max(32 << 20, 2 * est), 64 << 20))

    const = lambda shape: pl.BlockSpec(shape, lambda b: (0, 0))  # never-sliced weight refs

    rec2d, masks2d = pl.pallas_call(
        _make_kernel(Bt, P, S, D, cdt, approx_recip),
        out_shape=(
            jax.ShapeDtypeStruct((B * P, D), jnp.float32),
            jax.ShapeDtypeStruct((B * S, P), jnp.float32),
        ),
        grid_spec=pltpu.PrefetchScalarGridSpec(
            num_scalar_prefetch=0,
            grid=grid,
            in_specs=[
                pl.BlockSpec((Bt * P, D), lambda b: (b, 0)),    # target rows
                pl.BlockSpec((Bt * S, Ds), lambda b: (b, 0)),   # slot rows
                const((Ds, D)),                                 # Wp
                const((D, D)),                                  # Wq * 1/sqrt(D)
                const((D, 2 * D)),                              # [Wk | Wv@Wo]
                const((6, D)),                                  # packed biases / LN params
                const((1, 2 * D)),                              # [bk | bv@Wo + bo]
            ],
            out_specs=[
                pl.BlockSpec((Bt * P, D), lambda b: (b, 0)),    # reconstruction rows
                pl.BlockSpec((Bt * S, P), lambda b: (b, 0)),    # mask rows (already [S,P])
            ],
        ),
        compiler_params=pltpu.CompilerParams(
            dimension_semantics=("parallel",),
            vmem_limit_bytes=vmem_limit,
        ),
    )(target2d, slots2d, wp, wq, wkv, vecs, bkv)

    reconstruction = rec2d.reshape(B, P, D)
    masks = masks2d.reshape(B, S, P)        # contiguous reshape only; no HBM transpose
    return reconstruction, masks


def reference_forward(target, slots, p):
    """Pure-JAX reference with the module's original (unfolded) math."""
    D = target.shape[-1]
    slots_p = slots @ p["Wp"] + p["bp"]
    s_ln = _layer_norm(slots_p, p["g_s"], p["b_s"])
    t_ln = _layer_norm(target, p["g_t"], p["b_t"])
    q = t_ln @ p["Wq"] + p["bq"]
    k = s_ln @ p["Wk"] + p["bk"]
    v = s_ln @ p["Wv"] + p["bv"]
    scores = jnp.einsum("bpd,bsd->bps", q / math.sqrt(D), k)
    attn = jax.nn.softmax(scores, axis=-1)
    ctx = jnp.einsum("bps,bsd->bpd", attn, v)
    td = ctx @ p["Wo"] + p["bo"]
    return target + td, jnp.transpose(attn, (0, 2, 1))


def init_params(key, target_dim, slot_dim):
    ks = jax.random.split(key, 12)
    s = 0.05
    D, Ds = target_dim, slot_dim
    params = {
        "Wp": jax.random.normal(ks[0], (Ds, D), jnp.float32) * s,
        "bp": jax.random.normal(ks[1], (1, D), jnp.float32) * s,
        "g_s": jnp.ones((1, D), jnp.float32),
        "b_s": jnp.zeros((1, D), jnp.float32),
        "g_t": jnp.ones((1, D), jnp.float32),
        "b_t": jnp.zeros((1, D), jnp.float32),
        "Wq": jax.random.normal(ks[2], (D, D), jnp.float32) * s,
        "bq": jax.random.normal(ks[3], (1, D), jnp.float32) * s,
        "Wk": jax.random.normal(ks[4], (D, D), jnp.float32) * s,
        "bk": jax.random.normal(ks[5], (1, D), jnp.float32) * s,
        "Wv": jax.random.normal(ks[6], (D, D), jnp.float32) * s,
        "bv": jax.random.normal(ks[7], (1, D), jnp.float32) * s,
        "Wo": jax.random.normal(ks[8], (D, D), jnp.float32) * s,
        "bo": jax.random.normal(ks[9], (1, D), jnp.float32) * s,
    }
    return params


if __name__ == "__main__":
    B, P, S = 2, 16, 8          # batch, n_patches, n_objects
    D, Ds = 32, 16              # target_feature_dim, slot_feature_dim

    key = jax.random.PRNGKey(0)
    k_t, k_s, k_p = jax.random.split(key, 3)
    target = jax.random.normal(k_t, (B, P, D), jnp.float32)
    slots = jax.random.normal(k_s, (B, S, Ds), jnp.float32)
    params = init_params(k_p, D, Ds)

    rec_want, masks_want = reference_forward(target, slots, params)

    # Exact path: f32 MXU operands + exact reciprocal -> tight tolerances.
    rec, masks = cross_attn_forward(target, slots, params, compute_dtype=jnp.float32)
    rec = jax.block_until_ready(rec)
    masks = jax.block_until_ready(masks)
    assert rec.shape == (B, P, D) and masks.shape == (B, S, P)
    assert jnp.allclose(rec, rec_want, atol=1e-4, rtol=1e-4)
    assert jnp.allclose(masks, masks_want, atol=1e-5, rtol=1e-4)

    # Production path: bf16 MXU operands (f32 accumulate) + approx EUP reciprocal.
    rec_b, masks_b = cross_attn_forward(target, slots, params, compute_dtype=jnp.bfloat16)
    rec_b = jax.block_until_ready(rec_b)
    masks_b = jax.block_until_ready(masks_b)
    assert jnp.allclose(rec_b, rec_want, atol=5e-2, rtol=5e-2)
    assert jnp.allclose(masks_b, masks_want, atol=5e-2, rtol=5e-2)

    # TODO(synk): mlp_ratio != 0 branch (LN + GELU MLP) not implemented; module default is Identity.
    print("KERNEL_OK")
</pallas_src>

<mosaic_0001>
module attributes {stable_mosaic.version = 11 : i64} {
  func.func @kernel(%arg0: i32, %arg1: memref<32x32xf32, #tpu.memory_space<vmem>>, %arg2: memref<16x16xf32, #tpu.memory_space<vmem>>, %arg3: memref<16x32xf32, #tpu.memory_space<vmem>>, %arg4: memref<32x32xf32, #tpu.memory_space<vmem>>, %arg5: memref<32x64xf32, #tpu.memory_space<vmem>>, %arg6: memref<6x32xf32, #tpu.memory_space<vmem>>, %arg7: memref<1x64xf32, #tpu.memory_space<vmem>>, %arg8: memref<32x32xf32, #tpu.memory_space<vmem>>, %arg9: memref<16x16xf32, #tpu.memory_space<vmem>>) attributes {dimension_semantics = [#tpu.dimension_semantics<parallel>], iteration_bounds = array<i64: 1>, scalar_prefetch = 0 : i64, scratch_operands = 0 : i64, tpu.core_type = #tpu.core_type<tc>, window_params = [{transform_indices = @transform_0, window_bounds = array<i64: 32, 32>}, {transform_indices = @transform_1, window_bounds = array<i64: 16, 16>}, {pipeline_mode = #tpu.pipeline_mode<synchronous>, transform_indices = @transform_2, window_bounds = array<i64: 16, 32>}, {pipeline_mode = #tpu.pipeline_mode<synchronous>, transform_indices = @transform_3, window_bounds = array<i64: 32, 32>}, {pipeline_mode = #tpu.pipeline_mode<synchronous>, transform_indices = @transform_4, window_bounds = array<i64: 32, 64>}, {pipeline_mode = #tpu.pipeline_mode<synchronous>, transform_indices = @transform_5, window_bounds = array<i64: 6, 32>}, {pipeline_mode = #tpu.pipeline_mode<synchronous>, transform_indices = @transform_6, window_bounds = array<i64: 1, 64>}, {transform_indices = @transform_7, window_bounds = array<i64: 32, 32>}, {transform_indices = @transform_8, window_bounds = array<i64: 16, 16>}]} {
    %c0 = arith.constant 0 : index
    %c0_0 = arith.constant 0 : index
    %0 = vector.load %arg1[%c0, %c0_0] : memref<32x32xf32, #tpu.memory_space<vmem>>, vector<32x32xf32>
    %c0_1 = arith.constant 0 : index
    %c0_2 = arith.constant 0 : index
    %1 = vector.load %arg2[%c0_1, %c0_2] : memref<16x16xf32, #tpu.memory_space<vmem>>, vector<16x16xf32>
    %c0_3 = arith.constant 0 : index
    %c0_4 = arith.constant 0 : index
    %2 = vector.load %arg6[%c0_3, %c0_4] : memref<6x32xf32, #tpu.memory_space<vmem>>, vector<6x32xf32>
    %3 = vector.extract_strided_slice %2 {offsets = [0, 0], sizes = [1, 32], strides = [1, 1]} : vector<6x32xf32> to vector<1x32xf32>
    %4 = vector.extract_strided_slice %2 {offsets = [1, 0], sizes = [1, 32], strides = [1, 1]} : vector<6x32xf32> to vector<1x32xf32>
    %5 = vector.extract_strided_slice %2 {offsets = [2, 0], sizes = [1, 32], strides = [1, 1]} : vector<6x32xf32> to vector<1x32xf32>
    %6 = vector.extract_strided_slice %2 {offsets = [3, 0], sizes = [1, 32], strides = [1, 1]} : vector<6x32xf32> to vector<1x32xf32>
    %7 = vector.extract_strided_slice %2 {offsets = [4, 0], sizes = [1, 32], strides = [1, 1]} : vector<6x32xf32> to vector<1x32xf32>
    %8 = vector.extract_strided_slice %2 {offsets = [5, 0], sizes = [1, 32], strides = [1, 1]} : vector<6x32xf32> to vector<1x32xf32>
    %c0_5 = arith.constant 0 : index
    %c0_6 = arith.constant 0 : index
    %9 = vector.load %arg7[%c0_5, %c0_6] : memref<1x64xf32, #tpu.memory_space<vmem>>, vector<1x64xf32>
    %c0_7 = arith.constant 0 : index
    %c0_8 = arith.constant 0 : index
    %10 = vector.load %arg3[%c0_7, %c0_8] : memref<16x32xf32, #tpu.memory_space<vmem>>, vector<16x32xf32>
    %cst = arith.constant dense<0.000000e+00> : vector<16x32xf32>
    %11 = tpu.matmul %1, %10, %cst {dimension_numbers = #tpu.dot_dimension_numbers<[1], [0], [0], [1], [0, 0, 1, 1], [], []>} : vector<16x16xf32>, vector<16x32xf32>, vector<16x32xf32> -> vector<16x32xf32>
    %12 = vector.broadcast %3 : vector<1x32xf32> to vector<16x32xf32>
    %13 = arith.addf %11, %12 : vector<16x32xf32>
    %cst_9 = arith.constant dense<0.000000e+00> : vector<16xf32>
    %14 = vector.multi_reduction <add>, %13, %cst_9 [1] : vector<16x32xf32> to vector<16xf32>
    %15 = vector.shape_cast %14 : vector<16xf32> to vector<16x1xf32>
    %cst_10 = arith.constant 3.200000e+01 : f32
    %16 = vector.broadcast %cst_10 : f32 to vector<16x1xf32>
    %17 = arith.divf %15, %16 : vector<16x1xf32>
    %18 = vector.broadcast %17 : vector<16x1xf32> to vector<16x32xf32>
    %19 = arith.subf %13, %18 : vector<16x32xf32>
    %20 = arith.mulf %19, %19 : vector<16x32xf32>
    %cst_11 = arith.constant dense<0.000000e+00> : vector<16xf32>
    %21 = vector.multi_reduction <add>, %20, %cst_11 [1] : vector<16x32xf32> to vector<16xf32>
    %22 = vector.shape_cast %21 : vector<16xf32> to vector<16x1xf32>
    %cst_12 = arith.constant 3.200000e+01 : f32
    %23 = vector.broadcast %cst_12 : f32 to vector<16x1xf32>
    %24 = arith.divf %22, %23 : vector<16x1xf32>
    %25 = vector.broadcast %17 : vector<16x1xf32> to vector<16x32xf32>
    %26 = arith.subf %13, %25 : vector<16x32xf32>
    %cst_13 = arith.constant 9.99999974E-6 : f32
    %27 = vector.broadcast %cst_13 : f32 to vector<16x1xf32>
    %28 = arith.addf %24, %27 : vector<16x1xf32>
    %29 = math.rsqrt %28 : vector<16x1xf32>
    %30 = vector.broadcast %29 : vector<16x1xf32> to vector<16x32xf32>
    %31 = arith.mulf %26, %30 : vector<16x32xf32>
    %32 = vector.broadcast %4 : vector<1x32xf32> to vector<16x32xf32>
    %33 = arith.mulf %31, %32 : vector<16x32xf32>
    %34 = vector.broadcast %5 : vector<1x32xf32> to vector<16x32xf32>
    %35 = arith.addf %33, %34 : vector<16x32xf32>
    %cst_14 = arith.constant dense<0.000000e+00> : vector<32xf32>
    %36 = vector.multi_reduction <add>, %0, %cst_14 [1] : vector<32x32xf32> to vector<32xf32>
    %37 = vector.shape_cast %36 : vector<32xf32> to vector<32x1xf32>
    %cst_15 = arith.constant 3.200000e+01 : f32
    %38 = vector.broadcast %cst_15 : f32 to vector<32x1xf32>
    %39 = arith.divf %37, %38 : vector<32x1xf32>
    %40 = vector.broadcast %39 : vector<32x1xf32> to vector<32x32xf32>
    %41 = arith.subf %0, %40 : vector<32x32xf32>
    %42 = arith.mulf %41, %41 : vector<32x32xf32>
    %cst_16 = arith.constant dense<0.000000e+00> : vector<32xf32>
    %43 = vector.multi_reduction <add>, %42, %cst_16 [1] : vector<32x32xf32> to vector<32xf32>
    %44 = vector.shape_cast %43 : vector<32xf32> to vector<32x1xf32>
    %cst_17 = arith.constant 3.200000e+01 : f32
    %45 = vector.broadcast %cst_17 : f32 to vector<32x1xf32>
    %46 = arith.divf %44, %45 : vector<32x1xf32>
    %47 = vector.broadcast %39 : vector<32x1xf32> to vector<32x32xf32>
    %48 = arith.subf %0, %47 : vector<32x32xf32>
    %cst_18 = arith.constant 9.99999974E-6 : f32
    %49 = vector.broadcast %cst_18 : f32 to vector<32x1xf32>
    %50 = arith.addf %46, %49 : vector<32x1xf32>
    %51 = math.rsqrt %50 : vector<32x1xf32>
    %52 = vector.broadcast %51 : vector<32x1xf32> to vector<32x32xf32>
    %53 = arith.mulf %48, %52 : vector<32x32xf32>
    %54 = vector.broadcast %6 : vector<1x32xf32> to vector<32x32xf32>
    %55 = arith.mulf %53, %54 : vector<32x32xf32>
    %56 = vector.broadcast %7 : vector<1x32xf32> to vector<32x32xf32>
    %57 = arith.addf %55, %56 : vector<32x32xf32>
    %c0_19 = arith.constant 0 : index
    %c0_20 = arith.constant 0 : index
    %58 = vector.load %arg4[%c0_19, %c0_20] : memref<32x32xf32, #tpu.memory_space<vmem>>, vector<32x32xf32>
    %cst_21 = arith.constant dense<0.000000e+00> : vector<32x32xf32>
    %59 = tpu.matmul %57, %58, %cst_21 {dimension_numbers = #tpu.dot_dimension_numbers<[1], [0], [0], [1], [0, 0, 1, 1], [], []>} : vector<32x32xf32>, vector<32x32xf32>, vector<32x32xf32> -> vector<32x32xf32>
    %60 = vector.broadcast %8 : vector<1x32xf32> to vector<32x32xf32>
    %61 = arith.addf %59, %60 : vector<32x32xf32>
    %c0_22 = arith.constant 0 : index
    %c0_23 = arith.constant 0 : index
    %62 = vector.load %arg5[%c0_22, %c0_23] : memref<32x64xf32, #tpu.memory_space<vmem>>, vector<32x64xf32>
    %cst_24 = arith.constant dense<0.000000e+00> : vector<16x64xf32>
    %63 = tpu.matmul %35, %62, %cst_24 {dimension_numbers = #tpu.dot_dimension_numbers<[1], [0], [0], [1], [0, 0, 1, 1], [], []>} : vector<16x32xf32>, vector<32x64xf32>, vector<16x64xf32> -> vector<16x64xf32>
    %64 = vector.broadcast %9 : vector<1x64xf32> to vector<16x64xf32>
    %65 = arith.addf %63, %64 : vector<16x64xf32>
    %66 = vector.shape_cast %61 : vector<32x32xf32> to vector<2x16x32xf32>
    %67 = vector.extract_strided_slice %65 {offsets = [0, 0], sizes = [16, 32], strides = [1, 1]} : vector<16x64xf32> to vector<16x32xf32>
    %68 = vector.shape_cast %67 : vector<16x32xf32> to vector<2x8x32xf32>
    %69 = vector.extract_strided_slice %65 {offsets = [0, 32], sizes = [16, 32], strides = [1, 1]} : vector<16x64xf32> to vector<16x32xf32>
    %70 = vector.shape_cast %69 : vector<16x32xf32> to vector<2x8x32xf32>
    "tpu.trace_start"() <{level = 10 : i32, message = "bpd,bsd->bps"}> : () -> ()
    %cst_25 = arith.constant dense<0.000000e+00> : vector<2x16x8xf32>
    %71 = tpu.matmul %66, %68, %cst_25 {dimension_numbers = #tpu.dot_dimension_numbers<[2], [2], [1], [1], [0, 0, 0, 1, 1, 1], [0], [0]>} : vector<2x16x32xf32>, vector<2x8x32xf32>, vector<2x16x8xf32> -> vector<2x16x8xf32>
    "tpu.trace_stop"() : () -> ()
    %cst_26 = arith.constant dense<0xFF800000> : vector<2x16xf32>
    %72 = vector.multi_reduction <maximumf>, %71, %cst_26 [2] : vector<2x16x8xf32> to vector<2x16xf32>
    %73 = vector.shape_cast %72 : vector<2x16xf32> to vector<2x16x1xf32>
    %74 = vector.broadcast %73 : vector<2x16x1xf32> to vector<2x16x8xf32>
    %75 = arith.subf %71, %74 : vector<2x16x8xf32>
    %76 = math.exp %75 : vector<2x16x8xf32>
    %cst_27 = arith.constant dense<0.000000e+00> : vector<2x16xf32>
    %77 = vector.multi_reduction <add>, %76, %cst_27 [2] : vector<2x16x8xf32> to vector<2x16xf32>
    %78 = vector.shape_cast %77 : vector<2x16xf32> to vector<2x16x1xf32>
    %79 = tpu.reciprocal %78 : vector<2x16x1xf32> -> vector<2x16x1xf32>
    %80 = vector.broadcast %79 : vector<2x16x1xf32> to vector<2x16x8xf32>
    %81 = arith.mulf %76, %80 : vector<2x16x8xf32>
    "tpu.trace_start"() <{level = 10 : i32, message = "bps,bsd->bpd"}> : () -> ()
    %cst_28 = arith.constant dense<0.000000e+00> : vector<2x16x32xf32>
    %82 = tpu.matmul %81, %70, %cst_28 {dimension_numbers = #tpu.dot_dimension_numbers<[2], [1], [1], [2], [0, 0, 0, 1, 1, 2], [0], [0]>} : vector<2x16x8xf32>, vector<2x8x32xf32>, vector<2x16x32xf32> -> vector<2x16x32xf32>
    "tpu.trace_stop"() : () -> ()
    %83 = vector.shape_cast %82 : vector<2x16x32xf32> to vector<32x32xf32>
    %84 = arith.addf %0, %83 : vector<32x32xf32>
    %c0_29 = arith.constant 0 : index
    %c0_30 = arith.constant 0 : index
    %85 = vector.load %arg8[%c0_29, %c0_30] : memref<32x32xf32, #tpu.memory_space<vmem>>, vector<32x32xf32>
    tpu.vector_store %arg8[%c0_29, %c0_30], %84 {strides = array<i32>} : memref<32x32xf32, #tpu.memory_space<vmem>>, vector<32x32xf32>,
    %86 = tpu.transpose %81, [0, 2, 1] : vector<2x16x8xf32> -> vector<2x8x16xf32>
    %87 = vector.shape_cast %86 : vector<2x8x16xf32> to vector<16x16xf32>
    %c0_31 = arith.constant 0 : index
    %c0_32 = arith.constant 0 : index
    %88 = vector.load %arg9[%c0_31, %c0_32] : memref<16x16xf32, #tpu.memory_space<vmem>>, vector<16x16xf32>
    tpu.vector_store %arg9[%c0_31, %c0_32], %87 {strides = array<i32>} : memref<16x16xf32, #tpu.memory_space<vmem>>, vector<16x16xf32>,
    return
  }
  func.func @transform_0(%arg0: i32) -> (i32, i32) {
    %c0_i32 = arith.constant 0 : i32
    %c0_i32_0 = arith.constant 0 : i32
    return %arg0, %c0_i32 : i32, i32
  }
  func.func @transform_1(%arg0: i32) -> (i32, i32) {
    %c0_i32 = arith.constant 0 : i32
    %c0_i32_0 = arith.constant 0 : i32
    return %arg0, %c0_i32 : i32, i32
  }
  func.func @transform_2(%arg0: i32) -> (i32, i32) {
    %c0_i32 = arith.constant 0 : i32
    %c0_i32_0 = arith.constant 0 : i32
    %c0_i32_1 = arith.constant 0 : i32
    return %c0_i32, %c0_i32_0 : i32, i32
  }
  func.func @transform_3(%arg0: i32) -> (i32, i32) {
    %c0_i32 = arith.constant 0 : i32
    %c0_i32_0 = arith.constant 0 : i32
    %c0_i32_1 = arith.constant 0 : i32
    return %c0_i32, %c0_i32_0 : i32, i32
  }
  func.func @transform_4(%arg0: i32) -> (i32, i32) {
    %c0_i32 = arith.constant 0 : i32
    %c0_i32_0 = arith.constant 0 : i32
    %c0_i32_1 = arith.constant 0 : i32
    return %c0_i32, %c0_i32_0 : i32, i32
  }
  func.func @transform_5(%arg0: i32) -> (i32, i32) {
    %c0_i32 = arith.constant 0 : i32
    %c0_i32_0 = arith.constant 0 : i32
    %c0_i32_1 = arith.constant 0 : i32
    return %c0_i32, %c0_i32_0 : i32, i32
  }
  func.func @transform_6(%arg0: i32) -> (i32, i32) {
    %c0_i32 = arith.constant 0 : i32
    %c0_i32_0 = arith.constant 0 : i32
    %c0_i32_1 = arith.constant 0 : i32
    return %c0_i32, %c0_i32_0 : i32, i32
  }
  func.func @transform_7(%arg0: i32) -> (i32, i32) {
    %c0_i32 = arith.constant 0 : i32
    %c0_i32_0 = arith.constant 0 : i32
    return %arg0, %c0_i32 : i32, i32
  }
  func.func @transform_8(%arg0: i32) -> (i32, i32) {
    %c0_i32 = arith.constant 0 : i32
    %c0_i32_0 = arith.constant 0 : i32
    return %arg0, %c0_i32 : i32, i32
  }
}

</mosaic_0001>

<bundles_post_ra>
// kernel: tpu_custom_call.1
= control target key start
LH: loop header
LB: loop body
LE: loop exit
PB: predicated region body
PF: predicated region fallthrough
CT: control target
= control target key end

     0   :  { %14 = vsyncpa [#allocation3], 0  ;;  %s1599_s0 = inlined_call_operand.hbm [shape: f32[32,32], index: 0, kind: input, shape index: {}]   ;;  %s1600_s1 = inlined_call_operand.hbm [shape: f32[16,16], index: 1, kind: input, shape index: {}]   ;;  %s1601_s2 = inlined_call_operand.hbm [shape: f32[16,32], index: 2, kind: input, shape index: {}]   ;;  %s1602_s3 = inlined_call_operand.hbm [shape: f32[32,32], index: 3, kind: input, shape index: {}]   ;;  %s1603_s4 = inlined_call_operand.hbm [shape: f32[32,64], index: 4, kind: input, shape index: {}]   ;;  %s1604_s5 = inlined_call_operand.vmem [shape: f32[6,32], index: 5, kind: input, shape index: {}]   ;;  %s1605_s6 = inlined_call_operand.vmem [shape: f32[1,64], index: 6, kind: input, shape index: {}]   ;;  %s1606_s7 = inlined_call_operand.hbm [shape: f32[32,32], index: 7, kind: output, shape index: {0}]   ;;  %s1607_s8 = inlined_call_operand.hbm [shape: f32[16,16], index: 8, kind: output, shape index: {1}]  }
   0x1   :  { %15 = vsyncpa [#allocation6], 0 }
   0x2   :  { %16 = vsyncpa [#allocation9], 0 }
   0x3   :  { %17 = vsyncpa [#allocation4], 0 }
   0x4   :  { %18 = vsyncpa [#allocation13], 0  ;;  %s1312_s27 = smov [#allocation5]   ;;  %s1313_s29 = smov [#allocation8]  }
   0x5   :  { %s36_s28 = sshll.u32 %s1312_s27, 4  ;;  %s60_s30 = sshll.u32 %s1313_s29, 4  ;;  %s37_s28 = int_to_ptr.vmem [resolvable:$true] %s36_s28  ;;  %s1367_s30 = int_to_ptr.vmem [resolvable:$true] %s60_s30 }
   0x6   :  { %s1148_s11 = scalar_lea.hbm %s1600_s1, 256 }
   0x7   :  { %p1149_p0 = scmp.ne.s32.totalorder %s1600_s1, %s1148_s11  ;;  %p1152_p1 = scmp.lt.u32.totalorder %s1148_s11, %s1600_s1 }
   0x9   :  { %p1154_p2 = pnand %p1152_p1, %p1149_p0 }
   0xb   :  { %1157 = shalt.err (!%p1154_p2)
}
   0xc   :  { %s1158_s16 = scalar_lea.vmem %s37_s28, 256  ;;  %p1163_p4 = scmp.lt.s32.totalorder %s37_s28, %s37_s28 }
   0xd   :  { %p1159_p3 = scmp.ne.s32.totalorder %s37_s28, %s1158_s16  ;;  %p1164_p5 = scmp.lt.s32.totalorder %s1158_s16, %s1158_s16 }
   0xf   :  { %p1165_p6 = por %p1164_p5, %p1163_p4 }
  0x11   :  { %p1166_p7 = pnand %p1165_p6, %p1159_p3 }
  0x13   :  { %1169 = shalt.err (!%p1166_p7)
}
  0x14   :  { %s1314_s17 = smov 128   ;;  %s1315_s18 = smov 8  }
  0x15   :  { %42 = dma.hbm_to_vmem [thread:$0]  %s1600_s1, 256, %s37_s28, [#allocation6], %s1314_s17, %s1314_s17, %s1315_s18  }
  0x16   :  { %s1170_s23 = scalar_lea.hbm %s1602_s3, 512 }
  0x17   :  { %p1171_p8 = scmp.ne.s32.totalorder %s1602_s3, %s1170_s23  ;;  %p1174_p9 = scmp.lt.u32.totalorder %s1170_s23, %s1602_s3 }
  0x19   :  { %p1176_p10 = pnand %p1174_p9, %p1171_p8 }
  0x1b   :  { %1179 = shalt.err (!%p1176_p10)
}
  0x1c   :  { %s1180_s29 = scalar_lea.vmem %s1367_s30, 512  ;;  %p1185_p12 = scmp.lt.s32.totalorder %s1367_s30, %s1367_s30 }
  0x1d   :  { %p1181_p11 = scmp.ne.s32.totalorder %s1367_s30, %s1180_s29  ;;  %p1186_p13 = scmp.lt.s32.totalorder %s1180_s29, %s1180_s29 }
  0x1f   :  { %p1187_p0 = por %p1186_p13, %p1185_p12 }
  0x21   :  { %p1188_p1 = pnand %p1187_p0, %p1181_p11 }
  0x23   :  { %1191 = shalt.err (!%p1188_p1)
}
  0x24   :  { %66 = dma.hbm_to_vmem [thread:$0]  %s1602_s3, 512, %s1367_s30, [#allocation9], %s1314_s17, %s1314_s17, %s1315_s18  }
  0x25   :  { %s1316_s9 = smov [#allocation2]   ;;  %s1317_s11 = smov [#allocation7]  }
  0x26   :  { %s24_s10 = sshll.u32 %s1316_s9, 4  ;;  %s48_s12 = sshll.u32 %s1317_s11, 4  ;;  %s25_s10 = int_to_ptr.vmem [resolvable:$true] %s24_s10  ;;  %s1404_s12 = int_to_ptr.vmem [resolvable:$true] %s48_s12 }
  0x27   :  { %s1192_s15 = scalar_lea.hbm %s1599_s0, 512 }
  0x28   :  { %p1193_p2 = scmp.ne.s32.totalorder %s1599_s0, %s1192_s15  ;;  %p1196_p3 = scmp.lt.u32.totalorder %s1192_s15, %s1599_s0 }
  0x2a   :  { %p1198_p4 = pnand %p1196_p3, %p1193_p2 }
  0x2c   :  { %1201 = shalt.err (!%p1198_p4)
}
  0x2d   :  { %s1202_s3 = scalar_lea.vmem %s25_s10, 512  ;;  %p1207_p6 = scmp.lt.s32.totalorder %s25_s10, %s25_s10 }
  0x2e   :  { %p1203_p5 = scmp.ne.s32.totalorder %s25_s10, %s1202_s3  ;;  %p1208_p7 = scmp.lt.s32.totalorder %s1202_s3, %s1202_s3 }
  0x30   :  { %p1209_p8 = por %p1208_p7, %p1207_p6 }
  0x32   :  { %p1210_p9 = pnand %p1209_p8, %p1203_p5 }
  0x34   :  { %1213 = shalt.err (!%p1210_p9)
}
  0x35   :  { %30 = dma.hbm_to_vmem [thread:$0]  %s1599_s0, 512, %s25_s10, [#allocation3], %s1314_s17, %s1314_s17, %s1315_s18  }
  0x36   :  { %s1214_s25 = scalar_lea.hbm %s1601_s2, 256 }
  0x37   :  { %p1215_p10 = scmp.ne.s32.totalorder %s1601_s2, %s1214_s25  ;;  %p1218_p11 = scmp.lt.u32.totalorder %s1214_s25, %s1601_s2 }
  0x39   :  { %p1220_p12 = pnand %p1218_p11, %p1215_p10 }
  0x3b   :  { %1223 = shalt.err (!%p1220_p12)
}
  0x3c   :  { %s1224_s28 = scalar_lea.vmem %s1404_s12, 256  ;;  %p1229_p0 = scmp.lt.s32.totalorder %s1404_s12, %s1404_s12 }
  0x3d   :  { %p1225_p13 = scmp.ne.s32.totalorder %s1404_s12, %s1224_s28  ;;  %p1230_p1 = scmp.lt.s32.totalorder %s1224_s28, %s1224_s28 }
  0x3f   :  { %p1231_p2 = por %p1230_p1, %p1229_p0 }
  0x41   :  { %p1232_p3 = pnand %p1231_p2, %p1225_p13 }
  0x43   :  { %1235 = shalt.err (!%p1232_p3)
}
  0x44   :  { %54 = dma.hbm_to_vmem [thread:$0]  %s1601_s2, 256, %s1404_s12, [#allocation6], %s1314_s17, %s1314_s17, %s1315_s18  }
  0x45   :  { %s1318_s10 = smov [#allocation10]   ;;  %s1236_s15 = scalar_lea.hbm %s1603_s4, 512 }
  0x46   :  { %s72_s11 = sshll.u32 %s1318_s10, 4  ;;  %p1237_p4 = scmp.ne.s32.totalorder %s1603_s4, %s1236_s15  ;;  %s73_s11 = int_to_ptr.vmem [resolvable:$true] %s72_s11 }
  0x47   :  { %p1240_p5 = scmp.lt.u32.totalorder %s1236_s15, %s1603_s4 }
  0x49   :  { %p1242_p6 = pnand %p1240_p5, %p1237_p4 }
  0x4b   :  { %1245 = shalt.err (!%p1242_p6)
}
  0x4c   :  { %s1246_s3 = scalar_lea.vmem %s73_s11, 512  ;;  %p1251_p8 = scmp.lt.s32.totalorder %s73_s11, %s73_s11 }
  0x4d   :  { %p1247_p7 = scmp.ne.s32.totalorder %s73_s11, %s1246_s3  ;;  %p1252_p9 = scmp.lt.s32.totalorder %s1246_s3, %s1246_s3 }
  0x4f   :  { %p1253_p10 = por %p1252_p9, %p1251_p8 }
  0x51   :  { %p1254_p11 = pnand %p1253_p10, %p1247_p7 }
  0x53   :  { %1257 = shalt.err (!%p1254_p11)
}
  0x54   :  { %78 = dma.hbm_to_vmem [thread:$0]  %s1603_s4, 512, %s73_s11, [#allocation9], %s1314_s17, %s1314_s17, %s1315_s18  }
  0x55   :  { %1302 = dma.done.wait [#allocation3], 512  }
  0x56   :  { %1303 = vsyncadd [#allocation3], 4294966784 }
  0x57   :  { %1304 = dma.done.wait [#allocation6], 512  }
  0x58   :  { %1305 = vsyncadd [#allocation6], 4294966784 }
  0x59   :  { %1306 = dma.done.wait [#allocation9], 1024  }
  0x5a   :  { %1307 = vsyncadd [#allocation9], 4294966272  ;;  %vm112_vm0 = vcmask 130048   ;;  %vm194_vm1 = vcmask 261120   ;;  %v106_v0 = vld [vmem:[#allocation7] sm:$0xff]  ;;  %v107_v1 = vld [vmem:[#allocation7 + $0x8] sm:$0xff]  ;;  %v108_v9 = vlaneseq }
  0x5b   :  { %v102_v2 = vld [vmem:[#allocation5] sm:$0xff]  ;;  %v1089_v3 = vpack.c.bf16 %v107_v1, %v106_v0  ;;  %v1459_v5 = vld [vmem:[#allocation2 + $0x8] sm:$0xff]  ;;  %v1478_v23 = vld [vmem:[#allocation2 + $0x18] sm:$0xff]  ;;  %vm666_vm2 = vcmask 64512   ;;  %s1320_s23 = smov [#allocation12]  }
  0x5c   :  { %1041 = vmatprep.mubr.msk.f32.mxu0 %vm112_vm0, %v102_v2  ;;  %v1457_v4 = vld [vmem:[#allocation2] sm:$0xff]  ;;  %v237_v7 = vsel %vm194_vm1, %v1459_v5, 0.0  ;;  %v103_v8 = vld [vmem:[#allocation5 + $0x8] sm:$0xff]  ;;  %v1466_v10 = vshrl.u32 %v108_v9, 7  ;;  %v1481_v25 = vld [vmem:[#allocation2 + $0x10] sm:$0xff]  ;;  %v243_v27 = vsel %vm194_vm1, %v1478_v23, 0.0 }
  0x5d   :  { %v234_v6 = vsel %vm194_vm1, %v1457_v4, 0.0  ;;  %1090 = vmatprep.subr.bf16.mxu0 %v1089_v3  ;;  %238 = vadd.xlane.f32.xlu1 %v237_v7  ;;  %v1472_v12 = vld [vmem:[%s1604_s5] sm:$0x3f]  ;;  %v240_v29 = vsel %vm194_vm1, %v1481_v25, 0.0  ;;  %v303_v35 = vld [vmem:[#allocation8 + $0x8] sm:$0xff]  ;;  %v304_v36 = vld [vmem:[#allocation8 + $0x10] sm:$0xff] }
  0x5e   :  { %235 = vadd.xlane.f32.xlu0 %v234_v6  ;;  %1092 = vmatpush3.bf16.msra.mxu0 %v1089_v3  ;;  %v110_v11 = vsub.s32 0, %v1466_v10  ;;  %v302_v34 = vld [vmem:[#allocation8] sm:$0xff]  ;;  %v305_v38 = vld [vmem:[#allocation8 + $0x18] sm:$0xff]  ;;  %v288_v2 = vsub.s32 3, %v1466_v10  ;;  %v296_v3 = vsub.s32 4, %v1466_v10  ;;  %s970_s24 = sshll.u32 %s1320_s23, 4  ;;  %s971_s24 = int_to_ptr.vmem [resolvable:$true] %s970_s24 }
  0x5f   :  { %v1093_v37 = vpack.c.bf16 %v303_v35, %v302_v34  ;;  %v1097_v39 = vpack.c.bf16 %v305_v38, %v304_v36  ;;  %v224_v38 = vsub.s32 1, %v1466_v10  ;;  %s1258_s25 = scalar_lea.vmem %s971_s24, 256  ;;  %p1263_p13 = scmp.lt.s32.totalorder %s971_s24, %s971_s24 }
  0x60   :  { %v111_v14 = vrot.slane %v1472_v12, %v110_v11  ;;  %v289_v6 = vrot.slane %v1472_v12, %v288_v2  ;;  %v297_v9 = vrot.slane %v1472_v12, %v296_v3  ;;  %p1259_p12 = scmp.ne.s32.totalorder %s971_s24, %s1258_s25  ;;  %p1264_p0 = scmp.lt.s32.totalorder %s1258_s25, %s1258_s25 }
  0x61   :  { %1042 = vmatmul.mubr.msk.f32.vlgmr.msra.gmra.mrb[0].mxu0 %vm112_vm0, %v103_v8  ;;  %1094 = vmatprep.subr.bf16.mxu1 %v1093_v37 }
  0x62   :  { %1096 = vmatpush3.bf16.msra.mxu1 %v1093_v37  ;;  %p1265_p1 = por %p1264_p0, %p1263_p13 }
  0x63   :  { %1098 = vmatprep.subr.bf16.mxu1 %v1097_v39 }
  0x64   :  { %p1266_p2 = pnand %p1265_p1, %p1259_p12 }
  0x66   :  { %1100 = vmatpush3.bf16.msra.mxu1 %v1097_v39 }
  0xea   :  { %v239_v16 = vpop.xlane.xlu1 %238 }
  0xeb   :  { %v236_v13 = vpop.xlane.xlu0 %235  ;;  %v247_v22 = vmul.f32 0.03125, %v239_v16 }
  0xec   :  { %v246_v15 = vmul.f32 0.03125, %v236_v13 }
  0xed   :  { %v251_v28 = vsub.f32 %v1459_v5, %v247_v22 }
  0xee   :  { %v1476_v21 = vsub.f32 %v1457_v4, %v246_v15 }
  0xef   :  { %v255_v32 = vmul.f32 %v251_v28, %v251_v28 }
  0xf0   :  { %v254_v30 = vmul.f32 %v1476_v21, %v1476_v21 }
  0xf1   :  { %v261_v33 = vsel %vm194_vm1, %v255_v32, 0.0 }
  0xf2   :  { %v258_v31 = vsel %vm194_vm1, %v254_v30, 0.0 }
 0x134   :  { %v1043_v17 = vpop.f32.mrb[0].mxu0 }
 0x135   :  { %v191_v18 = vadd.f32 %v1043_v17, %v111_v14  ;;  %v185_v19 = vpop.f32.mrb[1].mxu0 }
 0x136   :  { %v186_v20 = vadd.f32 %v185_v19, %v111_v14  ;;  %v408_v19 = vld [vmem:[#allocation10 + $0x8] sm:$0xff] }
 0x137   :  { %v198_v24 = vsel %vm194_vm1, %v191_v18, 0.0 }
 0x138   :  { %199 = vadd.xlane.f32.xlu1 %v198_v24  ;;  %v195_v26 = vsel %vm194_vm1, %v186_v20, 0.0  ;;  %v410_v24 = vld [vmem:[#allocation10 + $0x18] sm:$0xff] }
 0x139   :  { %196 = vadd.xlane.f32.xlu0 %v195_v26 }
 0x13c   :  { %244 = vadd.xlane.f32.xlu1 %v243_v27 }
 0x13d   :  { %241 = vadd.xlane.f32.xlu0 %v240_v29 }
 0x141   :  { %259 = vadd.xlane.f32.xlu0 %v258_v31 }
 0x145   :  { %262 = vadd.xlane.f32.xlu0 %v261_v33 }
 0x1c5   :  { %v200_v40 = vpop.xlane.xlu1 %199 }
 0x1c6   :  { %v203_v41 = vmul.f32 0.03125, %v200_v40  ;;  %v197_v42 = vpop.xlane.xlu0 %196 }
 0x1c7   :  { %v202_v43 = vmul.f32 0.03125, %v197_v42  ;;  %v230_v42 = vsub.s32 2, %v1466_v10 }
 0x1c8   :  { %v1493_v44 = vsub.f32 %v191_v18, %v203_v41  ;;  %v407_v18 = vld [vmem:[#allocation10] sm:$0xff]  ;;  %v225_v41 = vrot.slane %v1472_v12, %v224_v38 }
 0x1c9   :  { %v1495_v45 = vsub.f32 %v186_v20, %v202_v43  ;;  %v245_v46 = vpop.xlane.xlu1 %244  ;;  %v409_v20 = vld [vmem:[#allocation10 + $0x10] sm:$0xff]  ;;  %v1101_v22 = vpack.c.bf16 %v408_v19, %v407_v18 }
 0x1ca   :  { %v242_v47 = vpop.xlane.xlu0 %241  ;;  %v207_v48 = vmul.f32 %v1493_v44, %v1493_v44  ;;  %v249_v49 = vmul.f32 0.03125, %v245_v46  ;;  %v1105_v26 = vpack.c.bf16 %v410_v24, %v409_v20 }
 0x1cb   :  { %v248_v50 = vmul.f32 0.03125, %v242_v47  ;;  %v206_v53 = vmul.f32 %v1495_v45, %v1495_v45  ;;  %1102 = vmatprep.subr.bf16.mxu0 %v1101_v22 }
 0x1cc   :  { %v211_v51 = vsel %vm194_vm1, %v207_v48, 0.0  ;;  %v1501_v52 = vsub.f32 %v1478_v23, %v249_v49  ;;  %1104 = vmatpush3.bf16.msra.mxu0 %v1101_v22  ;;  %v231_v49 = vrot.slane %v1472_v12, %v230_v42 }
 0x1cd   :  { %v1506_v54 = vsub.f32 %v1481_v25, %v248_v50  ;;  %212 = vadd.xlane.f32.xlu1 %v211_v51  ;;  %v208_v59 = vsel %vm194_vm1, %v206_v53, 0.0  ;;  %1106 = vmatprep.subr.bf16.mxu0 %v1105_v26 }
 0x1ce   :  { %v260_v55 = vpop.xlane.xlu0 %259  ;;  %v257_v56 = vmul.f32 %v1501_v52, %v1501_v52 }
 0x1cf   :  { %v270_v57 = vmul.f32 0.03125, %v260_v55  ;;  %v256_v58 = vmul.f32 %v1506_v54, %v1506_v54 }
 0x1d0   :  { %v267_v63 = vsel %vm194_vm1, %v257_v56, 0.0  ;;  %1108 = vmatpush3.bf16.msra.mxu0 %v1105_v26 }
 0x1d1   :  { %v274_v60 = vadd.f32 1e-05, %v270_v57  ;;  %209 = vadd.xlane.f32.xlu1 %v208_v59  ;;  %v264_v61 = vsel %vm194_vm1, %v256_v58, 0.0 }
 0x1d2   :  { %265 = vadd.xlane.f32.xlu0 %v264_v61  ;;  %v263_v62 = vpop.xlane.xlu0 %262 }
 0x1d3   :  { %1120 = vrsqrt.f32 %v274_v60  ;;  %v271_v0 = vmul.f32 0.03125, %v263_v62 }
 0x1d5   :  { %v275_v1 = vadd.f32 1e-05, %v271_v0  ;;  %268 = vadd.xlane.f32.xlu1 %v267_v63 }
 0x1d7   :  { %1122 = vrsqrt.f32 %v275_v1 }
 0x1dd   :  { %v1121_v7 = vpop.eup %1120 }
 0x1de   :  { %v282_v8 = vmul.f32 %v1121_v7, %v1476_v21 }
 0x1e0   :  { %v290_v11 = vmul.f32 %v289_v6, %v282_v8 }
 0x1e1   :  { %v1123_v13 = vpop.eup %1122 }
 0x1e2   :  { %v298_v14 = vadd.f32 %v297_v9, %v290_v11  ;;  %v283_v15 = vmul.f32 %v1123_v13, %v251_v28 }
 0x1e4   :  { %1052 = vmatprep.mubr.msk.f32.mxu1 %vm194_vm1, %v298_v14  ;;  %v291_v16 = vmul.f32 %v289_v6, %v283_v15 }
 0x1e6   :  { %v299_v17 = vadd.f32 %v297_v9, %v291_v16 }
 0x1e8   :  { %1053 = vmatmul.mubr.msk.f32.vlgmr.msra.gmra.mrb[0].mxu1 %vm194_vm1, %v299_v17 }
 0x25a   :  { %v213_v21 = vpop.xlane.xlu1 %212 }
 0x25b   :  { %v215_v27 = vmul.f32 0.03125, %v213_v21 }
 0x25d   :  { %v217_v29 = vadd.f32 1e-05, %v215_v27 }
 0x25e   :  { %v210_v28 = vpop.xlane.xlu1 %209 }
 0x25f   :  { %1124 = vrsqrt.f32 %v217_v29  ;;  %v214_v30 = vmul.f32 0.03125, %v210_v28  ;;  %v266_v31 = vpop.xlane.xlu0 %265 }
 0x260   :  { %v272_v32 = vmul.f32 0.03125, %v266_v31 }
 0x261   :  { %v216_v33 = vadd.f32 1e-05, %v214_v30 }
 0x262   :  { %v276_v34 = vadd.f32 1e-05, %v272_v32  ;;  %v269_v35 = vpop.xlane.xlu1 %268 }
 0x263   :  { %1126 = vrsqrt.f32 %v216_v33  ;;  %v273_v36 = vmul.f32 0.03125, %v269_v35 }
 0x264   :  { %1128 = vrsqrt.f32 %v276_v34 }
 0x265   :  { %v277_v37 = vadd.f32 1e-05, %v273_v36 }
 0x267   :  { %1130 = vrsqrt.f32 %v277_v37 }
 0x269   :  { %v1125_v39 = vpop.eup %1124 }
 0x26a   :  { %v221_v40 = vmul.f32 %v1125_v39, %v1493_v44 }
 0x26c   :  { %v227_v48 = vmul.f32 %v225_v41, %v221_v40 }
 0x26d   :  { %v1127_v43 = vpop.eup %1126 }
 0x26e   :  { %v1129_v46 = vpop.eup %1128  ;;  %v220_v47 = vmul.f32 %v1127_v43, %v1495_v45  ;;  %v233_v44 = vadd.f32 %v231_v49, %v227_v48 }
 0x26f   :  { %v284_v50 = vmul.f32 %v1129_v46, %v1506_v54  ;;  %v308_v54 = vsub.s32 5, %v1466_v10 }
 0x270   :  { %v226_v51 = vmul.f32 %v225_v41, %v220_v47 }
 0x271   :  { %v1131_v53 = vpop.eup %1130  ;;  %v292_v55 = vmul.f32 %v289_v6, %v284_v50  ;;  %v309_v60 = vrot.slane %v1472_v12, %v308_v54 }
 0x272   :  { %v232_v56 = vadd.f32 %v231_v49, %v226_v51  ;;  %v285_v57 = vmul.f32 %v1131_v53, %v1501_v52  ;;  %v994_v52 = vld [vmem:[%s1605_s6] ss:$0 sm:$0xff]  ;;  %s1319_s6 = smov 96  }
 0x273   :  { %v300_v58 = vadd.f32 %v297_v9, %v292_v55 }
 0x274   :  { %1066 = vmatprep.mubr.msk.f32.mxu0 %vm194_vm1, %v232_v56  ;;  %v293_v59 = vmul.f32 %v289_v6, %v285_v57 }
 0x275   :  { %1055 = vmatprep.mubr.msk.f32.mxu1 %vm194_vm1, %v300_v58  ;;  %1067 = vmatmul.mubr.msk.f32.vlgmr.msra.gmra.mrb[2].mxu0 %vm194_vm1, %v233_v44 }
 0x276   :  { %v301_v45 = vadd.f32 %v297_v9, %v293_v59 }
 0x278   :  { %1056 = vmatmul.mubr.msk.f32.gmra.mrb[2].mxu1 %vm194_vm1, %v301_v45 }
 0x2bb   :  { %v1054_v61 = vpop.f32.mrb[0].mxu1 }
 0x2bc   :  { %v388_v62 = vpop.f32.mrb[1].mxu1  ;;  %v394_v12 = vadd.f32 %v1054_v61, %v309_v60 }
 0x2bd   :  { %v389_v63 = vadd.f32 %v388_v62, %v309_v60 }
 0x2bf   :  { %1071 = vmatprep.mubr.msk.f32.mxu0 %vm194_vm1, %v389_v63 }
 0x348   :  { %v1068_v0 = vpop.f32.mrb[2].mxu0 }
 0x349   :  { %v495_v1 = vadd.f32 %v1068_v0, %v994_v52  ;;  %v489_v2 = vpop.f32.mrb[3].mxu0 }
 0x34a   :  { %v490_v3 = vadd.f32 %v994_v52, %v489_v2 }
 0x34b   :  { %v1057_v6 = vpop.f32.mrb[2].mxu1  ;;  %1074 = vmatprep.subr.msk.mxu1 %vm194_vm1, %v495_v1 }
 0x34c   :  { %v398_v7 = vpop.f32.mrb[3].mxu1  ;;  %1069 = vmatprep.subr.msk.mxu0 %vm194_vm1, %v490_v3  ;;  %1075 = vmatpush3.xpose.msk.msra.mxu1 %vm194_vm1, %v495_v1  ;;  %v404_v8 = vadd.f32 %v1057_v6, %v309_v60 }
 0x34d   :  { %v399_v10 = vadd.f32 %v398_v7, %v309_v60  ;;  %1070 = vmatpush3.xpose.msk.msra.mxu0 %vm194_vm1, %v490_v3 }
 0x34f   :  { %1076 = vmatprep.mubr.msk.f32.mxu1 %vm194_vm1, %v399_v10 }
 0x350   :  { %1072 = vmatmul.mubr.msk.f32.vlgmr.msra.gmra.mrb[4].mxu0 %vm194_vm1, %v394_v12  ;;  %1077 = vmatmul.mubr.msk.f32.vlgmr.msra.gmra.mrb[4].mxu1 %vm194_vm1, %v404_v8 }
 0x423   :  { %v1073_v9 = vpop.f32.mrb[4].mxu0  ;;  %v1078_v11 = vpop.f32.mrb[4].mxu1 }
 0x424   :  { %v573_v13 = vpop.f32.mrb[5].mxu0  ;;  %v657_v14 = vpop.f32.mrb[5].mxu1  ;;  %v670_v17 = vsel %vm666_vm2, %v1073_v9, -inf  ;;  %v676_v18 = vsel %vm666_vm2, %v1078_v11, -inf }
 0x425   :  { %v667_v15 = vsel %vm666_vm2, %v573_v13, -inf  ;;  %v673_v16 = vsel %vm666_vm2, %v657_v14, -inf }
 0x426   :  { %668 = vmax.xlane.f32.xlu0 %v667_v15  ;;  %674 = vmax.xlane.f32.xlu1 %v673_v16 }
 0x42a   :  { %671 = vmax.xlane.f32.xlu0 %v670_v17  ;;  %677 = vmax.xlane.f32.xlu1 %v676_v18 }
 0x4b3   :  { %v675_v19 = vpop.xlane.xlu1 %674  ;;  %v669_v20 = vpop.xlane.xlu0 %668 }
 0x4b4   :  { %v681_v22 = vsub.f32 %v657_v14, %v675_v19  ;;  %v679_v24 = vsub.f32 %v573_v13, %v669_v20 }
 0x4b6   :  { %v687_v28 = vmul.f32 1.442695, %v681_v22  ;;  %v683_v32 = vmul.f32 1.442695, %v679_v24 }
 0x4b7   :  { %v678_v26 = vpop.xlane.xlu1 %677  ;;  %v672_v21 = vpop.xlane.xlu0 %671 }
 0x4b8   :  { %v682_v27 = vsub.f32 %v1078_v11, %v678_v26  ;;  %v680_v29 = vsub.f32 %v1073_v9, %v672_v21 }
 0x4ba   :  { %v689_v30 = vmul.f32 1.442695, %v682_v27  ;;  %v685_v31 = vmul.f32 1.442695, %v680_v29 }
 0x4bc   :  { %1132 = vpow2.f32 %v689_v30 }
 0x4bd   :  { %1134 = vpow2.f32 %v685_v31 }
 0x4be   :  { %1136 = vpow2.f32 %v687_v28 }
 0x4bf   :  { %1138 = vpow2.f32 %v683_v32 }
 0x4c6   :  { %v1133_v33 = vpop.eup %1132 }
 0x4c7   :  { %v1135_v34 = vpop.eup %1134  ;;  %v700_v35 = vsel %vm666_vm2, %v1133_v33, 0.0 }
 0x4c8   :  { %v1137_v36 = vpop.eup %1136  ;;  %701 = vadd.xlane.f32.xlu1 %v700_v35  ;;  %v694_v37 = vsel %vm666_vm2, %v1135_v34, 0.0 }
 0x4c9   :  { %v1139_v38 = vpop.eup %1138  ;;  %695 = vadd.xlane.f32.xlu0 %v694_v37  ;;  %v697_v39 = vsel %vm666_vm2, %v1137_v36, 0.0 }
 0x4ca   :  { %v691_v40 = vsel %vm666_vm2, %v1139_v38, 0.0 }
 0x4cc   :  { %698 = vadd.xlane.f32.xlu1 %v697_v39 }
 0x4cd   :  { %692 = vadd.xlane.f32.xlu0 %v691_v40 }
 0x4dd   :  { %795 = vrot.lane.b32.xlu1 %v495_v1, %s1319_s6 }
 0x4e3   :  { %711 = vrot.lane.b32.xlu0 %v490_v3, %s1319_s6 }
 0x555   :  { %v702_v41 = vpop.xlane.xlu1 %701 }
 0x556   :  { %v696_v42 = vpop.xlane.xlu0 %695  ;;  %1140 = vrcp.f32 %v702_v41 }
 0x557   :  { %1142 = vrcp.f32 %v696_v42 }
 0x559   :  { %v699_v43 = vpop.xlane.xlu1 %698 }
 0x55a   :  { %1144 = vrcp.f32 %v699_v43  ;;  %v693_v46 = vpop.xlane.xlu0 %692 }
 0x55b   :  { %1146 = vrcp.f32 %v693_v46 }
 0x55d   :  { %v796_v47 = vpop.permute.xlu1 %795 }
 0x55e   :  { %v712_v48 = vpop.permute.xlu0 %711  ;;  %1084 = vmatprep.subr.mxu1 %v796_v47 }
 0x55f   :  { %1079 = vmatprep.subr.mxu0 %v712_v48  ;;  %1085 = vmatpush3.msra.mxu1 %v796_v47 }
 0x560   :  { %1080 = vmatpush3.msra.mxu0 %v712_v48  ;;  %v1141_v49 = vpop.eup %1140 }
 0x561   :  { %v1143_v50 = vpop.eup %1142  ;;  %v710_v57 = vmul.f32 %v1141_v49, %v1133_v33 }
 0x562   :  { %v708_v44 = vmul.f32 %v1143_v50, %v1135_v34 }
 0x564   :  { %v1145_v51 = vpop.eup %1144 }
 0x565   :  { %v1147_v53 = vpop.eup %1146  ;;  %v709_v55 = vmul.f32 %v1145_v51, %v1137_v36 }
 0x566   :  { %v707_v56 = vmul.f32 %v1147_v53, %v1139_v38 }
 0x567   :  { %1086 = vmatprep.mubr.msk.f32.mxu1 %vm666_vm2, %v709_v55  ;;  %919 = vxpose.xlu0.b32.start [1/2] (short) (narrow) %v709_v55, 8 }
 0x568   :  { %887 = vxpose.xlu1.b32.start [1/2] (short) (narrow) %v707_v56, 8  ;;  %1081 = vmatprep.mubr.msk.f32.mxu0 %vm666_vm2, %v707_v56 }
 0x569   :  { %1082 = vmatmul.mubr.msk.f32.vlgmr.msra.gmra.mrb[6].mxu0 %vm666_vm2, %v708_v44  ;;  %1087 = vmatmul.mubr.msk.f32.vlgmr.msra.gmra.mrb[6].mxu1 %vm666_vm2, %v710_v57 }
 0x56b   :  { %920 = vxpose.xlu0.b32.end [2/2] (short) (narrow) %v710_v57, 8 }
 0x56c   :  { %888 = vxpose.xlu1.b32.end [2/2] (short) (narrow) %v708_v44, 8 }
 0x5e7   :  { %v935_v58 = vpop.trf.xlu0 }
 0x5e8   :  { %v903_v59 = vpop.trf.xlu1  ;;  %952 = vst.msk [vmem:[#allocation12 + $0x8] sm:$0xff] %vm112_vm0, %v935_v58 }
 0x5e9   :  { %951 = vst.msk [vmem:[#allocation12] sm:$0xff] %vm112_vm0, %v903_v59 }
 0x5ea   :  { %1269 = shalt.err (!%p1266_p2)
}
 0x5eb   :  { %s1270_s29 = scalar_lea.hbm %s1607_s8, 256 }
 0x5ec   :  { %p1271_p3 = scmp.ne.s32.totalorder %s1607_s8, %s1270_s29  ;;  %p1274_p4 = scmp.lt.u32.totalorder %s1270_s29, %s1607_s8 }
 0x5ee   :  { %p1276_p5 = pnand %p1274_p4, %p1271_p3 }
 0x5f0   :  { %1279 = shalt.err (!%p1276_p5)
}
 0x5f1   :  { %976 = dma.vmem_to_hbm [thread:$0]  %s971_s24, 256, %s1607_s8, [#allocation13], %s1314_s17, %s1314_s17, %s1315_s18  }
 0x5f2   :  { %s1321_s13 = smov [#allocation11]  }
 0x5f3   :  { %s958_s14 = sshll.u32 %s1321_s13, 4  ;;  %s959_s14 = int_to_ptr.vmem [resolvable:$true] %s958_s14 }
 0x5f4   :  { %s1280_s8 = scalar_lea.vmem %s959_s14, 512  ;;  %p1285_p7 = scmp.lt.s32.totalorder %s959_s14, %s959_s14 }
 0x5f5   :  { %p1281_p6 = scmp.ne.s32.totalorder %s959_s14, %s1280_s8  ;;  %p1286_p8 = scmp.lt.s32.totalorder %s1280_s8, %s1280_s8 }
 0x5f7   :  { %p1287_p9 = por %p1286_p8, %p1285_p7 }
 0x5f9   :  { %p1288_p10 = pnand %p1287_p9, %p1281_p6 }
 0x63c   :  { %v1083_v45 = vpop.f32.mrb[6].mxu0  ;;  %v1088_v54 = vpop.f32.mrb[6].mxu1 }
 0x63d   :  { %v880_v60 = vadd.f32 %v1083_v45, %v1459_v5  ;;  %v882_v61 = vadd.f32 %v1088_v54, %v1478_v23  ;;  %v786_v62 = vpop.f32.mrb[7].mxu0  ;;  %v870_v63 = vpop.f32.mrb[7].mxu1 }
 0x63e   :  { %v879_v52 = vadd.f32 %v786_v62, %v1457_v4  ;;  %v881_v0 = vadd.f32 %v870_v63, %v1481_v25 }
 0x63f   :  { %884 = vst.msk [vmem:[#allocation11 + $0x8] sm:$0xff] %vm194_vm1, %v880_v60  ;;  %886 = vst.msk [vmem:[#allocation11 + $0x18] sm:$0xff] %vm194_vm1, %v882_v61 }
 0x640   :  { %883 = vst.msk [vmem:[#allocation11] sm:$0xff] %vm194_vm1, %v879_v52  ;;  %885 = vst.msk [vmem:[#allocation11 + $0x10] sm:$0xff] %vm194_vm1, %v881_v0 }
 0x641   :  { %1291 = shalt.err (!%p1288_p10)
}
 0x642   :  { %s1292_s19 = scalar_lea.hbm %s1606_s7, 512 }
 0x643   :  { %p1293_p11 = scmp.ne.s32.totalorder %s1606_s7, %s1292_s19  ;;  %p1296_p12 = scmp.lt.u32.totalorder %s1292_s19, %s1606_s7 }
 0x645   :  { %p1298_p13 = pnand %p1296_p12, %p1293_p11 }
 0x647   :  { %1301 = shalt.err (!%p1298_p13)
}
 0x648   :  { %964 = dma.vmem_to_hbm [thread:$0]  %s959_s14, 512, %s1606_s7, [#allocation4], %s1314_s17, %s1314_s17, %s1315_s18  }
 0x649   :  { %1308 = dma.done.wait [#allocation4], 512  }
 0x64a   :  { %1309 = vsyncadd [#allocation4], 4294966784 }
 0x64b   :  { %1310 = dma.done.wait [#allocation13], 256  }
 0x64c   :  { %1311 = vsyncadd [#allocation13], 4294967040 }
 0x64d   :  { %983 = vsyncpa [#allocation3], 1 }
 0x64e   :  { %984 = vsyncpa [#allocation6], 1 }
 0x64f   :  { %985 = vsyncpa [#allocation9], 1 }
 0x650   :  { %986 = vsyncpa [#allocation4], 1 }
 0x651   :  { %987 = vsyncpa [#allocation13], 1 }

</bundles_post_ra>
